<compile_context>
chip_gen: v6e
topology: v6e:2x2x1
jax: 0.10.0
libtpu: 0.0.40
codegen_flags: <defaults>
</compile_context>

<pallas_src>
import functools

import jax
import jax.numpy as jnp
from jax.experimental import pallas as pl
from jax.experimental.pallas import tpu as pltpu

TILE_B_DEFAULT = 2048   # rows/step sweet spot (>=85% of HBM roofline per tiling data)
MIN_GRID_STEPS = 8      # keep the pipeline fed / both v7x TensorCores busy


def _round_up(n, m):
    return (n + m - 1) // m * m


def mlp_kernel(x_ref, w1_ref, b1_ref, w2_ref, b2_ref, w3_ref, b3_ref,
               w4_ref, b4_ref, o_ref):
    # fc1 + ReLU: x is read as f32 from HBM and cast to bf16 here (MXU fast path,
    # f32 accumulation via preferred_element_type; bias-add / ReLU in f32 on the VPU).
    x = x_ref[...].astype(jnp.bfloat16)
    h = jnp.dot(x, w1_ref[...], preferred_element_type=jnp.float32)
    h = jnp.maximum(h + b1_ref[...], 0.0)
    # fc2 + ReLU
    h = jnp.dot(h.astype(jnp.bfloat16), w2_ref[...],
                preferred_element_type=jnp.float32)
    h = jnp.maximum(h + b2_ref[...], 0.0)
    # fc3 + ReLU
    h = jnp.dot(h.astype(jnp.bfloat16), w3_ref[...],
                preferred_element_type=jnp.float32)
    h = jnp.maximum(h + b3_ref[...], 0.0)
    # dropout: eval-mode identity (p=0.3 only active in training)
    # out (logits, no activation) -- written dense & unpadded (n_classes columns).
    o = jnp.dot(h.astype(jnp.bfloat16), w4_ref[...],
                preferred_element_type=jnp.float32)
    o_ref[...] = (o + b4_ref[...]).astype(o_ref.dtype)


@functools.partial(jax.jit, static_argnames=("tile_b",))
def simple_predictor_forward(x, kparams, tile_b=None):
    """x: [B, feature_dim] float32.  kparams: prepare_params() output (bf16 W, f32 b)."""
    B, feature_dim = x.shape
    n_classes = kparams["w4"].shape[1]

    # Batch tile: multiple of 8 sublanes, <= TILE_B_DEFAULT, and small enough to keep
    # >= MIN_GRID_STEPS grid steps whenever the batch allows it.
    if tile_b is None:
        tile_b = min(TILE_B_DEFAULT, _round_up(pl.cdiv(B, MIN_GRID_STEPS), 8))
    tile_b = max(8, _round_up(int(tile_b), 8))
    grid = (pl.cdiv(B, tile_b),)   # ragged tail handled by Pallas masking (no jnp.pad)

    w1, b1 = kparams["w1"], kparams["b1"]
    w2, b2 = kparams["w2"], kparams["b2"]
    w3, b3 = kparams["w3"], kparams["b3"]
    w4, b4 = kparams["w4"], kparams["b4"]

    const = lambda i: (0, 0)  # weights/biases: same block every step -> stay resident

    flops = 2 * B * (feature_dim * 256 + 256 * 64 + 64 * 16 + 16 * n_classes)
    param_bytes = sum(int(kparams[k].size) * kparams[k].dtype.itemsize for k in kparams)
    bytes_accessed = 4 * B * feature_dim + param_bytes + 4 * B * n_classes

    out = pl.pallas_call(
        mlp_kernel,
        out_shape=jax.ShapeDtypeStruct((B, n_classes), jnp.float32),
        grid=grid,
        in_specs=[
            pl.BlockSpec((tile_b, feature_dim), lambda i: (i, 0)),
            pl.BlockSpec(w1.shape, const), pl.BlockSpec(b1.shape, const),
            pl.BlockSpec(w2.shape, const), pl.BlockSpec(b2.shape, const),
            pl.BlockSpec(w3.shape, const), pl.BlockSpec(b3.shape, const),
            pl.BlockSpec(w4.shape, const), pl.BlockSpec(b4.shape, const),
        ],
        out_specs=pl.BlockSpec((tile_b, n_classes), lambda i: (i, 0)),
        compiler_params=pltpu.CompilerParams(
            dimension_semantics=("parallel",),      # v7x: shard batch grid over 2 TCs
            vmem_limit_bytes=32 * 1024 * 1024,      # budgeted against v7x 64 MiB/TC
        ),
        cost_estimate=pl.CostEstimate(
            flops=flops, transcendentals=0, bytes_accessed=bytes_accessed),
    )(x, w1, b1, w2, b2, w3, b3, w4, b4)

    return out


def init_params(key, feature_dim=64, n_classes=3):
    """Deterministic f32 init mimicking nn.Linear's U(-1/sqrt(fan_in), 1/sqrt(fan_in))."""
    dims = [(feature_dim, 256), (256, 64), (64, 16), (16, n_classes)]
    params = {}
    keys = jax.random.split(key, 2 * len(dims))
    for i, (fan_in, fan_out) in enumerate(dims):
        bound = 1.0 / (fan_in ** 0.5)
        w = jax.random.uniform(keys[2 * i], (fan_in, fan_out),
                               minval=-bound, maxval=bound, dtype=jnp.float32)
        # biases kept 2D (1, fan_out) so they live cleanly in VMEM and broadcast.
        b = jax.random.uniform(keys[2 * i + 1], (1, fan_out),
                               minval=-bound, maxval=bound, dtype=jnp.float32)
        params[f"w{i + 1}"] = w
        params[f"b{i + 1}"] = b
    return params


def prepare_params(params):
    """One-time conversion to kernel dtypes (done outside the jitted forward):
    weights -> bf16 MXU operands, biases -> f32."""
    kp = {}
    for i in range(1, 5):
        kp[f"w{i}"] = params[f"w{i}"].astype(jnp.bfloat16)
        kp[f"b{i}"] = params[f"b{i}"].astype(jnp.float32)
    return kp


def reference_forward(x, params):
    """Pure-JAX reference matching the kernel's bf16-operand / f32-accumulate math."""
    def lin(h, w, b):
        return jnp.dot(h.astype(jnp.bfloat16), w.astype(jnp.bfloat16),
                       preferred_element_type=jnp.float32) + b
    h = jnp.maximum(lin(x, params["w1"], params["b1"]), 0.0)
    h = jnp.maximum(lin(h, params["w2"], params["b2"]), 0.0)
    h = jnp.maximum(lin(h, params["w3"], params["b3"]), 0.0)
    return lin(h, params["w4"], params["b4"])


if __name__ == "__main__":
    key = jax.random.PRNGKey(0)
    k_x, k_x2, k_p = jax.random.split(key, 3)

    feature_dim, n_classes = 64, 3
    params = init_params(k_p, feature_dim=feature_dim, n_classes=n_classes)
    kparams = prepare_params(params)

    # Case 1: tiny batch (single grid step).
    B = 8
    x = jax.random.normal(k_x, (B, feature_dim), dtype=jnp.float32)
    out = jax.block_until_ready(simple_predictor_forward(x, kparams))
    ref = reference_forward(x, params)
    assert out.shape == (B, n_classes)
    assert jnp.allclose(out, ref, atol=1e-2, rtol=1e-2), \
        float(jnp.max(jnp.abs(out - ref)))

    # Case 2: multi-step grid with a ragged batch (exercises pipeline + tail masking).
    B2 = 200
    x2 = jax.random.normal(k_x2, (B2, feature_dim), dtype=jnp.float32)
    out2 = jax.block_until_ready(simple_predictor_forward(x2, kparams, tile_b=32))
    ref2 = reference_forward(x2, params)
    assert out2.shape == (B2, n_classes)
    assert jnp.allclose(out2, ref2, atol=1e-2, rtol=1e-2), \
        float(jnp.max(jnp.abs(out2 - ref2)))

    print("KERNEL_OK")
</pallas_src>

<mosaic_0001>
module attributes {stable_mosaic.version = 11 : i64} {
  func.func @mlp_kernel(%arg0: i32, %arg1: memref<8x64xf32, #tpu.memory_space<vmem>>, %arg2: memref<64x256xbf16, #tpu.memory_space<vmem>>, %arg3: memref<1x256xf32, #tpu.memory_space<vmem>>, %arg4: memref<256x64xbf16, #tpu.memory_space<vmem>>, %arg5: memref<1x64xf32, #tpu.memory_space<vmem>>, %arg6: memref<64x16xbf16, #tpu.memory_space<vmem>>, %arg7: memref<1x16xf32, #tpu.memory_space<vmem>>, %arg8: memref<16x3xbf16, #tpu.memory_space<vmem>>, %arg9: memref<1x3xf32, #tpu.memory_space<vmem>>, %arg10: memref<8x3xf32, #tpu.memory_space<vmem>>) attributes {dimension_semantics = [#tpu.dimension_semantics<parallel>], iteration_bounds = array<i64: 1>, scalar_prefetch = 0 : i64, scratch_operands = 0 : i64, tpu.core_type = #tpu.core_type<tc>, window_params = [{transform_indices = @transform_0, window_bounds = array<i64: 8, 64>}, {pipeline_mode = #tpu.pipeline_mode<synchronous>, transform_indices = @transform_1, window_bounds = array<i64: 64, 256>}, {pipeline_mode = #tpu.pipeline_mode<synchronous>, transform_indices = @transform_2, window_bounds = array<i64: 1, 256>}, {pipeline_mode = #tpu.pipeline_mode<synchronous>, transform_indices = @transform_3, window_bounds = array<i64: 256, 64>}, {pipeline_mode = #tpu.pipeline_mode<synchronous>, transform_indices = @transform_4, window_bounds = array<i64: 1, 64>}, {pipeline_mode = #tpu.pipeline_mode<synchronous>, transform_indices = @transform_5, window_bounds = array<i64: 64, 16>}, {pipeline_mode = #tpu.pipeline_mode<synchronous>, transform_indices = @transform_6, window_bounds = array<i64: 1, 16>}, {pipeline_mode = #tpu.pipeline_mode<synchronous>, transform_indices = @transform_7, window_bounds = array<i64: 16, 3>}, {pipeline_mode = #tpu.pipeline_mode<synchronous>, transform_indices = @transform_8, window_bounds = array<i64: 1, 3>}, {transform_indices = @transform_9, window_bounds = array<i64: 8, 3>}]} {
    %c0 = arith.constant 0 : index
    %c0_0 = arith.constant 0 : index
    %0 = vector.load %arg1[%c0, %c0_0] : memref<8x64xf32, #tpu.memory_space<vmem>>, vector<8x64xf32>
    %1 = arith.truncf %0 : vector<8x64xf32> to vector<8x64xbf16>
    %c0_1 = arith.constant 0 : index
    %c0_2 = arith.constant 0 : index
    %2 = vector.load %arg2[%c0_1, %c0_2] : memref<64x256xbf16, #tpu.memory_space<vmem>>, vector<64x256xbf16>
    %cst = arith.constant dense<0.000000e+00> : vector<8x256xf32>
    %3 = tpu.matmul %1, %2, %cst {dimension_numbers = #tpu.dot_dimension_numbers<[1], [0], [0], [1], [0, 0, 1, 1], [], []>} : vector<8x64xbf16>, vector<64x256xbf16>, vector<8x256xf32> -> vector<8x256xf32>
    %c0_3 = arith.constant 0 : index
    %c0_4 = arith.constant 0 : index
    %4 = vector.load %arg3[%c0_3, %c0_4] : memref<1x256xf32, #tpu.memory_space<vmem>>, vector<1x256xf32>
    %5 = vector.broadcast %4 : vector<1x256xf32> to vector<8x256xf32>
    %6 = arith.addf %3, %5 : vector<8x256xf32>
    %cst_5 = arith.constant 0.000000e+00 : f32
    %7 = vector.broadcast %cst_5 : f32 to vector<8x256xf32>
    %8 = arith.maximumf %6, %7 : vector<8x256xf32>
    %9 = arith.truncf %8 : vector<8x256xf32> to vector<8x256xbf16>
    %c0_6 = arith.constant 0 : index
    %c0_7 = arith.constant 0 : index
    %10 = vector.load %arg4[%c0_6, %c0_7] : memref<256x64xbf16, #tpu.memory_space<vmem>>, vector<256x64xbf16>
    %cst_8 = arith.constant dense<0.000000e+00> : vector<8x64xf32>
    %11 = tpu.matmul %9, %10, %cst_8 {dimension_numbers = #tpu.dot_dimension_numbers<[1], [0], [0], [1], [0, 0, 1, 1], [], []>} : vector<8x256xbf16>, vector<256x64xbf16>, vector<8x64xf32> -> vector<8x64xf32>
    %c0_9 = arith.constant 0 : index
    %c0_10 = arith.constant 0 : index
    %12 = vector.load %arg5[%c0_9, %c0_10] : memref<1x64xf32, #tpu.memory_space<vmem>>, vector<1x64xf32>
    %13 = vector.broadcast %12 : vector<1x64xf32> to vector<8x64xf32>
    %14 = arith.addf %11, %13 : vector<8x64xf32>
    %cst_11 = arith.constant 0.000000e+00 : f32
    %15 = vector.broadcast %cst_11 : f32 to vector<8x64xf32>
    %16 = arith.maximumf %14, %15 : vector<8x64xf32>
    %17 = arith.truncf %16 : vector<8x64xf32> to vector<8x64xbf16>
    %c0_12 = arith.constant 0 : index
    %c0_13 = arith.constant 0 : index
    %18 = vector.load %arg6[%c0_12, %c0_13] : memref<64x16xbf16, #tpu.memory_space<vmem>>, vector<64x16xbf16>
    %cst_14 = arith.constant dense<0.000000e+00> : vector<8x16xf32>
    %19 = tpu.matmul %17, %18, %cst_14 {dimension_numbers = #tpu.dot_dimension_numbers<[1], [0], [0], [1], [0, 0, 1, 1], [], []>} : vector<8x64xbf16>, vector<64x16xbf16>, vector<8x16xf32> -> vector<8x16xf32>
    %c0_15 = arith.constant 0 : index
    %c0_16 = arith.constant 0 : index
    %20 = vector.load %arg7[%c0_15, %c0_16] : memref<1x16xf32, #tpu.memory_space<vmem>>, vector<1x16xf32>
    %21 = vector.broadcast %20 : vector<1x16xf32> to vector<8x16xf32>
    %22 = arith.addf %19, %21 : vector<8x16xf32>
    %cst_17 = arith.constant 0.000000e+00 : f32
    %23 = vector.broadcast %cst_17 : f32 to vector<8x16xf32>
    %24 = arith.maximumf %22, %23 : vector<8x16xf32>
    %25 = arith.truncf %24 : vector<8x16xf32> to vector<8x16xbf16>
    %c0_18 = arith.constant 0 : index
    %c0_19 = arith.constant 0 : index
    %26 = vector.load %arg8[%c0_18, %c0_19] : memref<16x3xbf16, #tpu.memory_space<vmem>>, vector<16x3xbf16>
    %cst_20 = arith.constant dense<0.000000e+00> : vector<8x3xf32>
    %27 = tpu.matmul %25, %26, %cst_20 {dimension_numbers = #tpu.dot_dimension_numbers<[1], [0], [0], [1], [0, 0, 1, 1], [], []>} : vector<8x16xbf16>, vector<16x3xbf16>, vector<8x3xf32> -> vector<8x3xf32>
    %c0_21 = arith.constant 0 : index
    %c0_22 = arith.constant 0 : index
    %28 = vector.load %arg9[%c0_21, %c0_22] : memref<1x3xf32, #tpu.memory_space<vmem>>, vector<1x3xf32>
    %29 = vector.broadcast %28 : vector<1x3xf32> to vector<8x3xf32>
    %30 = arith.addf %27, %29 : vector<8x3xf32>
    %c0_23 = arith.constant 0 : index
    %c0_24 = arith.constant 0 : index
    %31 = vector.load %arg10[%c0_23, %c0_24] : memref<8x3xf32, #tpu.memory_space<vmem>>, vector<8x3xf32>
    tpu.vector_store %arg10[%c0_23, %c0_24], %30 {strides = array<i32>} : memref<8x3xf32, #tpu.memory_space<vmem>>, vector<8x3xf32>,
    return
  }
  func.func @transform_0(%arg0: i32) -> (i32, i32) {
    %c0_i32 = arith.constant 0 : i32
    %c0_i32_0 = arith.constant 0 : i32
    return %arg0, %c0_i32 : i32, i32
  }
  func.func @transform_1(%arg0: i32) -> (i32, i32) {
    %c0_i32 = arith.constant 0 : i32
    %c0_i32_0 = arith.constant 0 : i32
    %c0_i32_1 = arith.constant 0 : i32
    return %c0_i32, %c0_i32_0 : i32, i32
  }
  func.func @transform_2(%arg0: i32) -> (i32, i32) {
    %c0_i32 = arith.constant 0 : i32
    %c0_i32_0 = arith.constant 0 : i32
    %c0_i32_1 = arith.constant 0 : i32
    return %c0_i32, %c0_i32_0 : i32, i32
  }
  func.func @transform_3(%arg0: i32) -> (i32, i32) {
    %c0_i32 = arith.constant 0 : i32
    %c0_i32_0 = arith.constant 0 : i32
    %c0_i32_1 = arith.constant 0 : i32
    return %c0_i32, %c0_i32_0 : i32, i32
  }
  func.func @transform_4(%arg0: i32) -> (i32, i32) {
    %c0_i32 = arith.constant 0 : i32
    %c0_i32_0 = arith.constant 0 : i32
    %c0_i32_1 = arith.constant 0 : i32
    return %c0_i32, %c0_i32_0 : i32, i32
  }
  func.func @transform_5(%arg0: i32) -> (i32, i32) {
    %c0_i32 = arith.constant 0 : i32
    %c0_i32_0 = arith.constant 0 : i32
    %c0_i32_1 = arith.constant 0 : i32
    return %c0_i32, %c0_i32_0 : i32, i32
  }
  func.func @transform_6(%arg0: i32) -> (i32, i32) {
    %c0_i32 = arith.constant 0 : i32
    %c0_i32_0 = arith.constant 0 : i32
    %c0_i32_1 = arith.constant 0 : i32
    return %c0_i32, %c0_i32_0 : i32, i32
  }
  func.func @transform_7(%arg0: i32) -> (i32, i32) {
    %c0_i32 = arith.constant 0 : i32
    %c0_i32_0 = arith.constant 0 : i32
    %c0_i32_1 = arith.constant 0 : i32
    return %c0_i32, %c0_i32_0 : i32, i32
  }
  func.func @transform_8(%arg0: i32) -> (i32, i32) {
    %c0_i32 = arith.constant 0 : i32
    %c0_i32_0 = arith.constant 0 : i32
    %c0_i32_1 = arith.constant 0 : i32
    return %c0_i32, %c0_i32_0 : i32, i32
  }
  func.func @transform_9(%arg0: i32) -> (i32, i32) {
    %c0_i32 = arith.constant 0 : i32
    %c0_i32_0 = arith.constant 0 : i32
    return %arg0, %c0_i32 : i32, i32
  }
}

</mosaic_0001>

<bundles_post_ra>
// kernel: simple_predictor_forward.1
= control target key start
LH: loop header
LB: loop body
LE: loop exit
PB: predicated region body
PF: predicated region fallthrough
CT: control target
= control target key end

     0   :  { %v588_v1 = vmov 0   ;;  %vm95_vm0 = vcmask 523264   ;;  %v589_v27 = vmov 0.0   ;;  %v45_v29 = vlaneseq  ;;  %s750_s1 = inlined_call_operand.vmem [shape: bf16[64,256], index: 1, kind: input, shape index: {}]   ;;  %s751_s3 = inlined_call_operand.vmem [shape: bf16[256,64], index: 3, kind: input, shape index: {}]   ;;  %s752_s0 = inlined_call_operand.vmem [shape: f32[8,64], index: 0, kind: input, shape index: {}]   ;;  %s753_s5 = inlined_call_operand.vmem [shape: bf16[64,16], index: 5, kind: input, shape index: {}]   ;;  %s754_s2 = inlined_call_operand.vmem [shape: f32[1,256], index: 2, kind: input, shape index: {}]   ;;  %s755_s7 = inlined_call_operand.vmem [shape: bf16[16,3], index: 7, kind: input, shape index: {}]   ;;  %s756_s4 = inlined_call_operand.vmem [shape: f32[1,64], index: 4, kind: input, shape index: {}]   ;;  %s757_s6 = inlined_call_operand.vmem [shape: f32[1,16], index: 6, kind: input, shape index: {}]   ;;  %s758_s8 = inlined_call_operand.vmem [shape: f32[1,3], index: 8, kind: input, shape index: {}]   ;;  %s759_s9 = inlined_call_operand.vmem [shape: f32[8,3], index: 9, kind: output, shape index: {}]  }
   0x1   :  { %v555_v0 = vld [vmem:[%s750_s1 + $0x34] ss:$8 sps:$4 sm:$0xff]   ;;  %131 = vmatprep.mubr.bf16.mxu0 %v588_v1  ;;  %v557_v2 = vld [vmem:[%s750_s1 + $0x30] ss:$8 sps:$4 sm:$0xff]   ;;  %v558_v3 = vld [vmem:[%s750_s1 + $0x24] ss:$8 sps:$4 sm:$0xff]  }
   0x2   :  { %107 = vmatprep.subr.bf16.mxu0 %v555_v0  ;;  %v560_v4 = vld [vmem:[%s750_s1 + $0x20] ss:$8 sps:$4 sm:$0xff]   ;;  %v561_v5 = vld [vmem:[%s750_s1 + $0x14] ss:$8 sps:$4 sm:$0xff]   ;;  %v563_v6 = vld [vmem:[%s750_s1 + $0x10] ss:$8 sps:$4 sm:$0xff]  }
   0x3   :  { %108 = vmatpush1.bf16.msra.mxu0 %v557_v2  ;;  %v564_v7 = vld [vmem:[%s750_s1 + $0x4] ss:$8 sps:$4 sm:$0xff]   ;;  %v567_v8 = vld [vmem:[%s751_s3 + $0x78] sm:$0xff]   ;;  %v569_v10 = vld [vmem:[%s751_s3 + $0x70] sm:$0xff]   ;;  %v46_v30 = vshrl.u32 %v45_v29, 7  ;;  %vm590_vm1 = vmmov 0  }
   0x4   :  { %109 = vmatprep.subr.bf16.mxu0 %v558_v3  ;;  %v568_v9 = vld [vmem:[%s751_s3 + $0x38] sm:$0xff]   ;;  %505 = vmatprep.subr.bf16.mxu1 %v567_v8  ;;  %v566_v11 = vld [vmem:[%s750_s1] ss:$8 sps:$4 sm:$0xff]   ;;  %v570_v12 = vld [vmem:[%s751_s3 + $0x30] sm:$0xff]   ;;  %vm420_vm2 = vcmask 130048   ;;  %vm464_vm3 = vcmask 23552  }
   0x5   :  { %506 = vmatpush3.bf16.msra.mxu1 %v568_v9  ;;  %v571_v13 = vld [vmem:[%s751_s3 + $0x68] sm:$0xff]   ;;  %v33_v14 = vld [vmem:[%s752_s0] sm:$0xff]  ;;  %v575_v19 = vld [vmem:[%s751_s3 + $0x58] sm:$0xff]   ;;  %v47_v31 = vsub.s32 0, %v46_v30  ;;  %v51_v33 = vsub.s32 1, %v46_v30 }
   0x6   :  { %507 = vmatprep.subr.bf16.mxu1 %v569_v10  ;;  %v572_v15 = vld [vmem:[%s751_s3 + $0x28] sm:$0xff]   ;;  %v34_v16 = vpack.c.bf16 %v33_v14, %v33_v14  ;;  %v573_v17 = vld [vmem:[%s751_s3 + $0x60] sm:$0xff]   ;;  %v576_v20 = vld [vmem:[%s751_s3 + $0x18] sm:$0xff]  }
   0x7   :  { %110 = vmatpush1.bf16.msra.mxu0 %v560_v4  ;;  %v574_v18 = vld [vmem:[%s751_s3 + $0x20] sm:$0xff]   ;;  %v577_v21 = vld [vmem:[%s751_s3 + $0x50] sm:$0xff]   ;;  %v579_v23 = vld [vmem:[%s751_s3 + $0x48] sm:$0xff]  }
   0x8   :  { %111 = vmatprep.subr.bf16.mxu0 %v561_v5  ;;  %v578_v22 = vld [vmem:[%s751_s3 + $0x10] sm:$0xff]   ;;  %v580_v24 = vld [vmem:[%s751_s3 + $0x8] sm:$0xff]   ;;  %v581_v25 = vld [vmem:[%s751_s3 + $0x40] sm:$0xff]  }
   0x9   :  { %508 = vmatpush3.bf16.msra.mxu1 %v570_v12  ;;  %v582_v26 = vld [vmem:[%s751_s3] sm:$0xff]   ;;  %v583_v28 = vld [vmem:[%s753_s5 + $0x18] sm:$0xff]   ;;  %v584_v46 = vld [vmem:[%s753_s5 + $0x10] sm:$0xff]  }
   0xa   :  { %509 = vmatprep.subr.bf16.mxu1 %v571_v13  ;;  %v43_v32 = vld [vmem:[%s754_s2] sm:$0x3]  ;;  %v585_v47 = vld [vmem:[%s753_s5 + $0x8] sm:$0xff]  }
   0xb   :  { %112 = vmatpush1.bf16.msra.mxu0 %v563_v6  ;;  %v48_v34 = vrot.slane %v43_v32, %v47_v31  ;;  %v52_v35 = vrot.slane %v43_v32, %v51_v33  ;;  %v586_v48 = vld [vmem:[%s753_s5] sm:$0xff]  }
   0xc   :  { %113 = vmatprep.subr.bf16.mxu0 %v564_v7  ;;  %v479_v50 = vld [vmem:[%s756_s4] ss:$0 sm:$0xff] }
   0xd   :  { %510 = vmatpush3.bf16.msra.mxu1 %v572_v15  ;;  %v587_v57 = vld [vmem:[%s755_s7] sm:$0xff]  }
   0xe   :  { %511 = vmatprep.subr.bf16.mxu1 %v573_v17  ;;  %v496_v59 = vld [vmem:[%s757_s6] ss:$0 sm:$0xff] }
   0xf   :  { %114 = vmatpush1.bf16.msra.mxu0 %v566_v11  ;;  %v502_v3 = vld [vmem:[%s758_s8] ss:$0 sm:$0xff] }
  0x10   :  { %534 = vmatprep.subr.bf16.mxu0 %v589_v27 }
  0x11   :  { %512 = vmatpush3.bf16.msra.mxu1 %v574_v18 }
  0x12   :  { %478 = vmatmul.mubr.msk.bf16.vlgmr.msra.gmra.mxu0 %vm95_vm0, %v34_v16  ;;  %513 = vmatprep.subr.bf16.mxu1 %v575_v19 }
  0x13   :  { %535 = vmatpush3.bf16.msra.mxu0 %v583_v28  ;;  %542 = vmatprep.mubr.msk.bf16.mxu0 %vm590_vm1, %v589_v27 }
  0x14   :  { %536 = vmatprep.subr.bf16.mxu0 %v589_v27 }
  0x15   :  { %514 = vmatpush3.bf16.msra.mxu1 %v576_v20 }
  0x16   :  { %515 = vmatprep.subr.bf16.mxu1 %v577_v21 }
  0x17   :  { %537 = vmatpush3.bf16.msra.mxu0 %v584_v46 }
  0x18   :  { %538 = vmatprep.subr.bf16.mxu0 %v589_v27 }
  0x19   :  { %516 = vmatpush3.bf16.msra.mxu1 %v578_v22 }
  0x1a   :  { %517 = vmatprep.subr.bf16.mxu1 %v579_v23 }
  0x1b   :  { %539 = vmatpush3.bf16.msra.mxu0 %v585_v47 }
  0x1c   :  { %540 = vmatprep.subr.bf16.mxu0 %v589_v27 }
  0x1d   :  { %518 = vmatpush3.bf16.msra.mxu1 %v580_v24 }
  0x1e   :  { %519 = vmatprep.subr.bf16.mxu1 %v581_v25 }
  0x1f   :  { %541 = vmatpush3.bf16.msra.mxu0 %v586_v48 }
  0x20   :  { %546 = vmatprep.subr.bf16.mxu0 %v589_v27 }
  0x21   :  { %520 = vmatpush3.bf16.msra.mxu1 %v582_v26 }
  0xd2   :  { %v133_v36 = vpop.f32.mrf.mxu0 }
  0xd3   :  { %v134_v37 = vadd.f32 %v133_v36, %v48_v34 }
  0xd4   :  { %v135_v38 = vpop.f32.mrf.mxu0 }
  0xd5   :  { %v136_v39 = vadd.f32 %v135_v38, %v52_v35  ;;  %v140_v40 = vmax.f32 %v134_v37, 0.0 }
  0xd6   :  { %v137_v41 = vpop.f32.mrf.mxu0 }
  0xd7   :  { %v141_v42 = vmax.f32 %v136_v39, 0.0  ;;  %v142_v45 = vpack.c.bf16 %v140_v40, %v140_v40 }
  0xd8   :  { %v138_v43 = vpop.f32.mrf.mxu0 }
  0xd9   :  { %v143_v44 = vpack.c.bf16 %v141_v42, %v141_v42 }
  0xdb   :  { %311 = vmatprep.mubr.bf16.mxu1 %v143_v44 }
  0xdc   :  { %312 = vmatmul.mubr.bf16.vlgmr.msra.gmra.mxu1 %v142_v45 }
 0x19c   :  { %v521_v49 = vpop.f32.mrf.mxu1 }
 0x19e   :  { %v522_v51 = vpop.f32.mrf.mxu1 }
 0x19f   :  { %v523_v52 = vadd.f32 %v522_v51, %v521_v49 }
 0x1a0   :  { %v524_v53 = vpop.f32.mrf.mxu1 }
 0x1a1   :  { %v314_v54 = vadd.f32 %v523_v52, %v479_v50 }
 0x1a2   :  { %v525_v55 = vpop.f32.mrf.mxu1 }
 0x1a3   :  { %v319_v56 = vmax.f32 %v314_v54, 0.0 }
 0x1a5   :  { %v320_v58 = vpack.c.bf16 %v319_v56, %v319_v56 }
 0x1a7   :  { %543 = vmatmul.mubr.msk.bf16.vlgmr.msra.gmra.mxu0 %vm95_vm0, %v320_v58 }
 0x1a8   :  { %547 = vmatpush3.bf16.msra.mxu0 %v587_v57  ;;  %548 = vmatprep.mubr.msk.bf16.mxu0 %vm590_vm1, %v589_v27 }
 0x267   :  { %v397_v60 = vpop.f32.mrf.mxu0 }
 0x268   :  { %v398_v61 = vadd.f32 %v496_v59, %v397_v60 }
 0x269   :  { %v544_v62 = vpop.f32.mrf.mxu0 }
 0x26a   :  { %v403_v63 = vmax.f32 %v398_v61, 0.0 }
 0x26b   :  { %v400_v0 = vpop.f32.mrf.mxu0 }
 0x26c   :  { %v404_v1 = vpack.c.bf16 %v403_v63, %v403_v63 }
 0x26d   :  { %v545_v2 = vpop.f32.mrf.mxu0 }
 0x26e   :  { %549 = vmatmul.mubr.msk.bf16.vlgmr.msra.gmra.mxu0 %vm420_vm2, %v404_v1 }
 0x32e   :  { %v458_v4 = vpop.f32.mrf.mxu0 }
 0x32f   :  { %v459_v5 = vadd.f32 %v502_v3, %v458_v4 }
 0x330   :  { %v550_v6 = vpop.f32.mrf.mxu0 }
 0x331   :  { %465 = vst.msk [vmem:[%s759_s9] sm:$0xff] %vm464_vm3, %v459_v5 }
 0x332   :  { %v461_v7 = vpop.f32.mrf.mxu0 }
 0x334   :  { %v551_v8 = vpop.f32.mrf.mxu0 }

</bundles_post_ra>
